<compile_context>
chip_gen: v6e
topology: v6e:2x2x1
jax: 0.10.0
libtpu: 0.0.40
codegen_flags: <defaults>
</compile_context>

<pallas_src>
import functools

import jax
import jax.numpy as jnp
from jax.experimental import pallas as pl
from jax.experimental.pallas import tpu as pltpu


def _sigmoid(x):
    return 1.0 / (1.0 + jnp.exp(-x))


def _input_proj_kernel(x_ref, w_ref, b_ref, out_ref):
    # One lane-dense matmul for every time step at once:
    # [T*B, Din] @ [Din, 4H] + b -> [T*B, 4H]
    out_ref[...] = (
        jnp.dot(x_ref[...], w_ref[...], preferred_element_type=jnp.float32)
        + b_ref[...]
    ).astype(out_ref.dtype)


def _lstm_recurrence_kernel(gx_ref, whh_ref, out_ref, h_sc, c_sc, *, hidden_dim):
    t = pl.program_id(0)

    @pl.when(t == 0)
    def _():
        h_sc[...] = jnp.zeros_like(h_sc)
        c_sc[...] = jnp.zeros_like(c_sc)

    H = hidden_dim
    # Recurrent projection: [B, H] @ [H, 4H] (weight pre-transposed, lane-dense 4H).
    gates = gx_ref[0] + jnp.dot(
        h_sc[...], whh_ref[...], preferred_element_type=jnp.float32
    )
    i_g = _sigmoid(gates[:, 0 * H:1 * H])
    f_g = _sigmoid(gates[:, 1 * H:2 * H])
    g_g = jnp.tanh(gates[:, 2 * H:3 * H])
    o_g = _sigmoid(gates[:, 3 * H:4 * H])

    c_new = f_g * c_sc[...] + i_g * g_g
    h_new = o_g * jnp.tanh(c_new)
    c_sc[...] = c_new
    h_sc[...] = h_new
    out_ref[0] = h_new.astype(out_ref.dtype)


def lstm_forward(x, w_ih, w_hh, b_ih, b_hh):
    """x: [B, T, Din]; w_ih: [4H, Din]; w_hh: [4H, H]; b_*: [4H] -> [B, T, H]."""
    B, T, Din = x.shape
    H4 = w_ih.shape[0]
    H = H4 // 4

    # Pre-transpose weights once (done by XLA, free) and fold the two biases.
    w_ih_t = jnp.transpose(w_ih)            # [Din, 4H]
    w_hh_t = jnp.transpose(w_hh)            # [H, 4H]
    bias = (b_ih + b_hh).reshape(1, H4)     # [1, 4H]

    # Time-major layout so the recurrence grid walks the leading (time) axis.
    x_tm = jnp.transpose(x, (1, 0, 2))      # [T, B, Din]
    x2d = x_tm.reshape(T * B, Din)

    vmem = pltpu.MemorySpace.VMEM

    # Stage 1: batched input projection for all time steps.
    gx2d = pl.pallas_call(
        _input_proj_kernel,
        out_shape=jax.ShapeDtypeStruct((T * B, H4), jnp.float32),
        in_specs=[
            pl.BlockSpec((T * B, Din), lambda: (0, 0), memory_space=vmem),
            pl.BlockSpec((Din, H4), lambda: (0, 0), memory_space=vmem),
            pl.BlockSpec((1, H4), lambda: (0, 0), memory_space=vmem),
        ],
        out_specs=pl.BlockSpec((T * B, H4), lambda: (0, 0), memory_space=vmem),
    )(x2d, w_ih_t, bias)
    gx = gx2d.reshape(T, B, H4)             # [T, B, 4H]

    # Stage 2: sequential recurrence over T; h/c live in VMEM scratch.
    out_tm = pl.pallas_call(
        functools.partial(_lstm_recurrence_kernel, hidden_dim=H),
        out_shape=jax.ShapeDtypeStruct((T, B, H), jnp.float32),
        grid=(T,),
        in_specs=[
            pl.BlockSpec((1, B, H4), lambda t: (t, 0, 0), memory_space=vmem),
            pl.BlockSpec((H, H4), lambda t: (0, 0), memory_space=vmem),
        ],
        out_specs=pl.BlockSpec((1, B, H), lambda t: (t, 0, 0), memory_space=vmem),
        scratch_shapes=[
            pltpu.VMEM((B, H), jnp.float32),   # h state
            pltpu.VMEM((B, H), jnp.float32),   # c state
        ],
        compiler_params=pltpu.CompilerParams(
            dimension_semantics=("arbitrary",),   # time recurrence is sequential
        ),
    )(gx, w_hh_t)

    return jnp.transpose(out_tm, (1, 0, 2))  # [B, T, H]


def lstm_reference(x, w_ih, w_hh, b_ih, b_hh):
    """Pure-JAX reference matching torch.nn.LSTM (single layer, batch_first)."""
    B, T, Din = x.shape
    H = w_hh.shape[1]

    def step(carry, x_t):
        h, c = carry
        gates = x_t @ w_ih.T + b_ih + h @ w_hh.T + b_hh
        i, f, g, o = jnp.split(gates, 4, axis=-1)
        i = jax.nn.sigmoid(i)
        f = jax.nn.sigmoid(f)
        g = jnp.tanh(g)
        o = jax.nn.sigmoid(o)
        c = f * c + i * g
        h = o * jnp.tanh(c)
        return (h, c), h

    h0 = jnp.zeros((B, H), jnp.float32)
    c0 = jnp.zeros((B, H), jnp.float32)
    xs = jnp.transpose(x, (1, 0, 2))
    _, hs = jax.lax.scan(step, (h0, c0), xs)
    return jnp.transpose(hs, (1, 0, 2))


if __name__ == "__main__":
    # Small shapes consistent with the module's forward(input_seq).
    batch, seq_len, input_dim, hidden_dim = 8, 8, 16, 32

    key = jax.random.PRNGKey(0)
    k_x, k_wi, k_wh, k_bi, k_bh = jax.random.split(key, 5)

    x = jax.random.normal(k_x, (batch, seq_len, input_dim), jnp.float32)
    bound = 1.0 / float(hidden_dim) ** 0.5   # PyTorch LSTM default init range
    w_ih = jax.random.uniform(
        k_wi, (4 * hidden_dim, input_dim), jnp.float32, -bound, bound)
    w_hh = jax.random.uniform(
        k_wh, (4 * hidden_dim, hidden_dim), jnp.float32, -bound, bound)
    b_ih = jax.random.uniform(
        k_bi, (4 * hidden_dim,), jnp.float32, -bound, bound)
    b_hh = jax.random.uniform(
        k_bh, (4 * hidden_dim,), jnp.float32, -bound, bound)

    out = lstm_forward(x, w_ih, w_hh, b_ih, b_hh)
    out = jax.block_until_ready(out)

    ref = lstm_reference(x, w_ih, w_hh, b_ih, b_hh)
    assert out.shape == (batch, seq_len, hidden_dim)
    assert jnp.allclose(out, ref, atol=1e-4, rtol=1e-4), float(
        jnp.max(jnp.abs(out - ref)))

    print("KERNEL_OK")
</pallas_src>

<mosaic_0001>
module attributes {stable_mosaic.version = 11 : i64} {
  func.func @_input_proj_kernel(%arg0: memref<64x16xf32, #tpu.memory_space<vmem>>, %arg1: memref<16x128xf32, #tpu.memory_space<vmem>>, %arg2: memref<1x128xf32, #tpu.memory_space<vmem>>, %arg3: memref<64x128xf32, #tpu.memory_space<vmem>>) attributes {dimension_semantics = [], scalar_prefetch = 0 : i64, scratch_operands = 0 : i64, tpu.core_type = #tpu.core_type<tc>} {
    %c0 = arith.constant 0 : index
    %c0_0 = arith.constant 0 : index
    %0 = vector.load %arg0[%c0, %c0_0] : memref<64x16xf32, #tpu.memory_space<vmem>>, vector<64x16xf32>
    %c0_1 = arith.constant 0 : index
    %c0_2 = arith.constant 0 : index
    %1 = vector.load %arg1[%c0_1, %c0_2] : memref<16x128xf32, #tpu.memory_space<vmem>>, vector<16x128xf32>
    %cst = arith.constant dense<0.000000e+00> : vector<64x128xf32>
    %2 = tpu.matmul %0, %1, %cst {dimension_numbers = #tpu.dot_dimension_numbers<[1], [0], [0], [1], [0, 0, 1, 1], [], []>} : vector<64x16xf32>, vector<16x128xf32>, vector<64x128xf32> -> vector<64x128xf32>
    %c0_3 = arith.constant 0 : index
    %c0_4 = arith.constant 0 : index
    %3 = vector.load %arg2[%c0_3, %c0_4] : memref<1x128xf32, #tpu.memory_space<vmem>>, vector<1x128xf32>
    %4 = vector.broadcast %3 : vector<1x128xf32> to vector<64x128xf32>
    %5 = arith.addf %2, %4 : vector<64x128xf32>
    %c0_5 = arith.constant 0 : index
    %c0_6 = arith.constant 0 : index
    %6 = vector.load %arg3[%c0_5, %c0_6] : memref<64x128xf32, #tpu.memory_space<vmem>>, vector<64x128xf32>
    tpu.vector_store %arg3[%c0_5, %c0_6], %5 {strides = array<i32>} : memref<64x128xf32, #tpu.memory_space<vmem>>, vector<64x128xf32>,
    return
  }
}

</mosaic_0001>

<bundles_post_ra>
// kernel: tpu_custom_call.1
= control target key start
LH: loop header
LB: loop body
LE: loop exit
PB: predicated region body
PF: predicated region fallthrough
CT: control target
= control target key end

     0   :  { %vm32_vm0 = vcmask 130048   ;;  %s317_s0 = inlined_call_operand.vmem [shape: f32[64,16], index: 0, kind: input, shape index: {}]   ;;  %s318_s1 = inlined_call_operand.vmem [shape: f32[16,128], index: 1, kind: input, shape index: {}]   ;;  %s319_s2 = inlined_call_operand.vmem [shape: f32[1,128], index: 2, kind: input, shape index: {}]   ;;  %s320_s3 = inlined_call_operand.hbm [shape: f32[64,128], index: 3, kind: output, shape index: {}]  }
   0x1   :  { %v24_v0 = vld [vmem:[%s318_s1 + $0x8] sm:$0xff]  ;;  %v23_v1 = vld [vmem:[%s318_s1] sm:$0xff] }
   0x2   :  { %205 = vmatprep.subr.mxu0 %v24_v0  ;;  %221 = vmatprep.subr.mxu1 %v24_v0  ;;  %v15_v2 = vld [vmem:[%s317_s0] sm:$0xff]  ;;  %v16_v4 = vld [vmem:[%s317_s0 + $0x8] sm:$0xff] }
   0x3   :  { %206 = vmatpush3.msra.mxu0 %v24_v0  ;;  %223 = vmatpush3.msra.mxu1 %v24_v0  ;;  %v19_v3 = vld [vmem:[%s317_s0 + $0x20] sm:$0xff]  ;;  %v20_v5 = vld [vmem:[%s317_s0 + $0x28] sm:$0xff] }
   0x4   :  { %207 = vmatprep.subr.mxu0 %v23_v1  ;;  %222 = vmatprep.subr.mxu1 %v23_v1 }
   0x5   :  { %8 = vsyncpa [#allocation3], 0  ;;  %208 = vmatpush3.msra.mxu0 %v23_v1  ;;  %224 = vmatpush3.msra.mxu1 %v23_v1  ;;  %v17_v6 = vld [vmem:[%s317_s0 + $0x10] sm:$0xff]  ;;  %v18_v8 = vld [vmem:[%s317_s0 + $0x18] sm:$0xff]  ;;  %s250_s6 = smov [#allocation2]  }
   0x6   :  { %v21_v7 = vld [vmem:[%s317_s0 + $0x30] sm:$0xff]  ;;  %209 = vmatprep.mubr.msk.f32.mxu0 %vm32_vm0, %v15_v2  ;;  %215 = vmatprep.mubr.msk.f32.mxu1 %vm32_vm0, %v19_v3  ;;  %v22_v9 = vld [vmem:[%s317_s0 + $0x38] sm:$0xff]  ;;  %v186_v10 = vld [vmem:[%s319_s2] ss:$0 sm:$0xff]  ;;  %s175_s0 = sshll.u32 %s250_s6, 4  ;;  %s176_s0 = int_to_ptr.vmem [resolvable:$true] %s175_s0 }
   0x7   :  { %210 = vmatmul.mubr.msk.f32.vlgmr.msra.gmra.mxu0 %vm32_vm0, %v16_v4  ;;  %216 = vmatmul.mubr.msk.f32.vlgmr.msra.gmra.mxu1 %vm32_vm0, %v20_v5  ;;  %s228_s2 = scalar_lea.vmem %s176_s0, 1024  ;;  %p233_p1 = scmp.lt.s32.totalorder %s176_s0, %s176_s0 }
   0x8   :  { %212 = vmatprep.mubr.msk.f32.mxu0 %vm32_vm0, %v17_v6  ;;  %218 = vmatprep.mubr.msk.f32.mxu1 %vm32_vm0, %v21_v7  ;;  %p229_p0 = scmp.ne.s32.totalorder %s176_s0, %s228_s2  ;;  %p234_p2 = scmp.lt.s32.totalorder %s228_s2, %s228_s2 }
   0xa   :  { %p235_p3 = por %p234_p2, %p233_p1 }
   0xb   :  { %213 = vmatmul.mubr.msk.f32.gmra.mxu0 %vm32_vm0, %v18_v8  ;;  %219 = vmatmul.mubr.msk.f32.gmra.mxu1 %vm32_vm0, %v22_v9 }
   0xc   :  { %p236_p4 = pnand %p235_p3, %p229_p0 }
  0xc7   :  { %v211_v11 = vpop.f32.mrf.mxu0  ;;  %v217_v12 = vpop.f32.mrf.mxu1 }
  0xc8   :  { %v129_v13 = vadd.f32 %v211_v11, %v186_v10  ;;  %v149_v14 = vadd.f32 %v217_v12, %v186_v10 }
  0xc9   :  { %v123_v15 = vpop.f32.mrf.mxu0  ;;  %v143_v16 = vpop.f32.mrf.mxu1 }
  0xca   :  { %163 = vst [vmem:[#allocation2 + $0x8] sm:$0xff] %v129_v13  ;;  %167 = vst [vmem:[#allocation2 + $0x28] sm:$0xff] %v149_v14  ;;  %v124_v17 = vadd.f32 %v186_v10, %v123_v15  ;;  %v144_v18 = vadd.f32 %v186_v10, %v143_v16 }
  0xcb   :  { %v214_v19 = vpop.f32.mrf.mxu0  ;;  %v220_v20 = vpop.f32.mrf.mxu1 }
  0xcc   :  { %162 = vst [vmem:[#allocation2] sm:$0xff] %v124_v17  ;;  %166 = vst [vmem:[#allocation2 + $0x20] sm:$0xff] %v144_v18  ;;  %v139_v21 = vadd.f32 %v214_v19, %v186_v10  ;;  %v159_v22 = vadd.f32 %v220_v20, %v186_v10 }
  0xcd   :  { %v133_v23 = vpop.f32.mrf.mxu0  ;;  %v153_v24 = vpop.f32.mrf.mxu1 }
  0xce   :  { %165 = vst [vmem:[#allocation2 + $0x18] sm:$0xff] %v139_v21  ;;  %169 = vst [vmem:[#allocation2 + $0x38] sm:$0xff] %v159_v22  ;;  %v134_v25 = vadd.f32 %v186_v10, %v133_v23  ;;  %v154_v26 = vadd.f32 %v186_v10, %v153_v24 }
  0xd0   :  { %164 = vst [vmem:[#allocation2 + $0x10] sm:$0xff] %v134_v25  ;;  %168 = vst [vmem:[#allocation2 + $0x30] sm:$0xff] %v154_v26 }
  0xd1   :  { %239 = shalt.err (!%p236_p4)
}
  0xd2   :  { %s251_s7 = smov 128   ;;  %s252_s8 = smov 8  }
  0xd3   :  { %181 = dma.vmem_to_hbm [thread:$0]  %s176_s0, 1024, %s320_s3, [#allocation3], %s251_s7, %s251_s7, %s252_s8  }
  0xd4   :  { %248 = dma.done.wait [#allocation3], 1024  }
  0xd5   :  { %249 = vsyncadd [#allocation3], 4294966272 }
  0xd6   :  { %185 = vsyncpa [#allocation3], 1 }

</bundles_post_ra>
